<compile_context>
chip_gen: v5e
topology: v5e:2x2
jax: 0.10.0
libtpu: 0.0.40
codegen_flags: <defaults>
</compile_context>

<pallas_src>
import functools

import jax
import jax.numpy as jnp
from jax.experimental import pallas as pl
from jax.experimental.pallas import tpu as pltpu


def _round_up(x, m):
    return (x + m - 1) // m * m


def _cdiv(a, b):
    return (a + b - 1) // b


def _default_vmem_limit():
    """Per-chip scoped-VMEM limit (review: don't hard-code 32 MiB on v6e)."""
    cap = 64 * 1024 * 1024
    try:
        cap = getattr(pltpu.get_tpu_info(), "vmem_capacity_bytes", cap)
    except Exception:
        pass
    if cap <= 64 * 1024 * 1024:          # v7x-class: 64 MiB physical per TC
        return 32 * 1024 * 1024
    return 96 * 1024 * 1024              # v5e / v6e: 128 MiB physical


# --------------------------------------------------------------------------
# Path A: one-hot MXU matmul (small / medium vocabularies)
# --------------------------------------------------------------------------
def _onehot_matmul_kernel(labels_ref, table_ref, out_ref):
    # labels_ref: (tb, 1) int32 VMEM block
    # table_ref : (v_pad, h) whole-array VMEM operand (single-buffered)
    # out_ref   : (tb, h) VMEM output block
    labels = labels_ref[...]                                      # (tb, 1)
    tb = labels.shape[0]
    v_pad = table_ref.shape[0]
    ids = jax.lax.broadcasted_iota(jnp.int32, (tb, v_pad), 1)
    one_hot = (labels == ids).astype(table_ref.dtype)             # (tb, v_pad)
    out_ref[...] = jnp.dot(one_hot, table_ref[...],
                           preferred_element_type=jnp.float32
                           ).astype(out_ref.dtype)


# --------------------------------------------------------------------------
# Path B: scalar-prefetch DMA row gather (large vocabularies / large rows)
# --------------------------------------------------------------------------
_GATHER_GROUP = 8   # rows per DMA group; tb is always a multiple of 8


def _gather_kernel(labels_ref, table_hbm_ref, out_ref, copy_sems):
    # labels_ref    : (b_pad,) int32 SMEM (scalar-prefetched)
    # table_hbm_ref : (v_pad, h) in HBM (memory_space=pl.ANY)
    # out_ref       : (tb, h) VMEM output block
    # copy_sems     : (2,) DMA semaphores (2-deep group window)
    tb, _ = out_ref.shape
    v_pad = table_hbm_ref.shape[0]
    base = pl.program_id(0) * tb
    g = _GATHER_GROUP
    ng = tb // g                                                   # static

    def issue_group(grp, slot):
        @pl.loop(0, g)
        def _issue(r):
            row = jnp.clip(labels_ref[base + grp * g + r], 0, v_pad - 1)
            pltpu.make_async_copy(table_hbm_ref.at[row],
                                  out_ref.at[grp * g + r],
                                  copy_sems.at[slot]).start()

    def wait_group(slot):
        # One wait whose descriptor covers g rows: DMA semaphores count
        # bytes, so this decrements exactly the sum of the g identical
        # single-row copies issued on this slot (no per-row wait loop).
        pltpu.make_async_copy(table_hbm_ref.at[pl.ds(0, g)],
                              out_ref.at[pl.ds(0, g)],
                              copy_sems.at[slot]).wait()

    # Prime up to two groups: caps in-flight row DMAs at 2 * g = 16.
    issue_group(0, 0)
    if ng > 1:
        issue_group(1, 1)

    @pl.loop(0, ng)
    def _drain(grp):
        slot = grp & 1
        wait_group(slot)

        @pl.when(grp + 2 < ng)
        def _():
            issue_group(grp + 2, slot)


# --------------------------------------------------------------------------
# Wrapper
# --------------------------------------------------------------------------
@functools.partial(jax.jit, static_argnames=("tb", "use_gather"))
def label_embed_pallas(labels, table, *, tb=None, use_gather=None):
    """Embedding lookup: out[i, :] = table[labels[i], :]."""
    b = labels.shape[0]
    v, h = table.shape
    v_pad = _round_up(v, 128)
    if v_pad != v:                       # lane / MXU-K alignment (zero rows)
        table = jnp.pad(table, ((0, v_pad - v), (0, 0)))

    # Batch tiling: minimize padding, keep tb a multiple of 8, and give v7x's
    # two TensorCores >=2 grid steps once the batch is large enough.
    if tb is None:
        nb_target = max(_cdiv(b, 256), 1)
        if b >= 256:
            nb_target = max(nb_target, 2)
        tb = _round_up(_cdiv(b, nb_target), 8)
    else:
        tb = min(_round_up(max(tb, 1), 8), _round_up(b, 8))
    b_pad = _round_up(b, tb)
    nb = b_pad // tb

    vmem_limit = _default_vmem_limit()
    itemsize = table.dtype.itemsize
    table_bytes = v_pad * h * itemsize
    row_bytes = h * itemsize

    if use_gather is None:
        # One-hot MXU path needs the (single-buffered) table + the (tb, v_pad)
        # one-hot / iota temporaries + label & output blocks resident in VMEM.
        onehot_bytes = tb * v_pad * (itemsize + 4)
        vmem_need = table_bytes + onehot_bytes + 4 * tb * h * itemsize
        fits_vmem = vmem_need <= vmem_limit // 2
        # Tiny rows make the gather path DMA-descriptor-issue-bound, so keep
        # those on the MXU even for fairly large V; large rows flip sooner.
        v_cap = 8192 if row_bytes < 2048 else 2048
        use_gather = (not fits_vmem) or (v_pad > v_cap)

    # Clip once so both paths treat out-of-range labels identically (they
    # read a zero padding row; PyTorch nn.Embedding would raise instead).
    labels_i32 = jnp.clip(labels.astype(jnp.int32), 0, v_pad - 1)
    if b_pad != b:
        labels_i32 = jnp.pad(labels_i32, (0, b_pad - b))

    if use_gather:
        out = pl.pallas_call(
            _gather_kernel,
            out_shape=jax.ShapeDtypeStruct((b_pad, h), table.dtype),
            grid_spec=pltpu.PrefetchScalarGridSpec(
                num_scalar_prefetch=1,                         # labels -> SMEM
                grid=(nb,),
                in_specs=[pl.BlockSpec(memory_space=pl.ANY)],  # table in HBM
                out_specs=pl.BlockSpec((tb, h), lambda i, labels: (i, 0)),
                scratch_shapes=[pltpu.SemaphoreType.DMA((2,))],
            ),
            compiler_params=pltpu.CompilerParams(
                dimension_semantics=("parallel",),
                vmem_limit_bytes=vmem_limit),
        )(labels_i32, table)
    else:
        out = pl.pallas_call(
            _onehot_matmul_kernel,
            out_shape=jax.ShapeDtypeStruct((b_pad, h), table.dtype),
            grid_spec=pltpu.PrefetchScalarGridSpec(
                num_scalar_prefetch=0,
                grid=(nb,),
                in_specs=[
                    pl.BlockSpec((tb, 1), lambda i: (i, 0)),   # labels block
                    # Whole table resident in VMEM, copied once, single-
                    # buffered (no 2x VMEM from pipeline double-buffering).
                    pl.BlockSpec(memory_space=pltpu.MemorySpace.VMEM),
                ],
                out_specs=pl.BlockSpec((tb, h), lambda i: (i, 0)),
            ),
            compiler_params=pltpu.CompilerParams(
                dimension_semantics=("parallel",),
                vmem_limit_bytes=vmem_limit),
        )(labels_i32.reshape(b_pad, 1), table)

    return out[:b] if b_pad != b else out


class LabelEmbedder:
    """JAX/Pallas port of the PyTorch LabelEmbedder (DiT class-label embedder)."""

    def __init__(self, num_classes, hidden_size, dropout_prob, key,
                 dtype=jnp.float32):
        use_cfg_embedding = int(dropout_prob > 0)
        v = num_classes + use_cfg_embedding
        # nn.Embedding default init: N(0, 1).  dtype=jnp.bfloat16 halves table
        # HBM/VMEM traffic on v6e/v7x (numerics decision; default matches f32).
        table = jax.random.normal(key, (v, hidden_size), dtype=dtype)
        self.embedding_table = table                 # unpadded (PyTorch param)
        # Pad V to a multiple of 128 once at construction (zero rows).
        v_pad = _round_up(v, 128)
        self._padded_table = (jnp.pad(table, ((0, v_pad - v), (0, 0)))
                              if v_pad != v else table)
        self.num_classes = num_classes
        self.dropout_prob = dropout_prob

    def token_drop(self, labels, force_drop_ids=None, rng=None):
        if force_drop_ids is None:
            # NOTE: pass a fresh rng per call for real stochastic dropout;
            # the PRNGKey(0) default only keeps the call runnable.
            if rng is None:
                rng = jax.random.PRNGKey(0)
            drop_ids = (jax.random.uniform(rng, (labels.shape[0],))
                        < self.dropout_prob)
        else:
            drop_ids = force_drop_ids == 1
        return jnp.where(drop_ids, self.num_classes, labels)

    def __call__(self, labels, train, force_drop_ids=None, rng=None):
        use_dropout = self.dropout_prob > 0
        if (train and use_dropout) or (force_drop_ids is not None):
            labels = self.token_drop(labels, force_drop_ids, rng)
        # NOTE: out-of-range labels read a zero padding row (PyTorch would
        # raise an index error) — token_drop never produces such labels.
        return label_embed_pallas(labels, self._padded_table)


if __name__ == "__main__":
    key = jax.random.PRNGKey(0)
    (k_table, k_labels, k_drop, k_table2,
     k_labels2, k_labels3) = jax.random.split(key, 6)

    # ---------- small-vocab path (single-dot one-hot MXU matmul) ----------
    num_classes, hidden_size, dropout_prob, batch = 16, 128, 0.1, 8
    embedder = LabelEmbedder(num_classes, hidden_size, dropout_prob, k_table)
    labels = jax.random.randint(k_labels, (batch,), 0, num_classes,
                                dtype=jnp.int32)

    # 1) eval path (no dropout)
    out_eval = jax.block_until_ready(embedder(labels, train=False))
    ref_eval = jnp.take(embedder.embedding_table, labels, axis=0)
    assert out_eval.shape == (batch, hidden_size)
    assert jnp.allclose(out_eval, ref_eval, atol=1e-5), "eval-path mismatch"

    # 2) forced CFG drop path (deterministic)
    force_drop_ids = jnp.array([1, 0, 1, 0, 0, 0, 1, 0], dtype=jnp.int32)
    out_drop = jax.block_until_ready(
        embedder(labels, train=False, force_drop_ids=force_drop_ids))
    dropped_labels = jnp.where(force_drop_ids == 1, num_classes, labels)
    ref_drop = jnp.take(embedder.embedding_table, dropped_labels, axis=0)
    assert jnp.allclose(out_drop, ref_drop, atol=1e-5), "drop-path mismatch"

    # 3) train path with stochastic dropout
    out_train = jax.block_until_ready(embedder(labels, train=True, rng=k_drop))
    assert out_train.shape == (batch, hidden_size)

    # 4) explicit DMA-gather kernel at the small shape (1 tile, 1 DMA group)
    out_gather = jax.block_until_ready(
        label_embed_pallas(labels, embedder._padded_table, use_gather=True))
    assert jnp.allclose(out_gather, ref_eval, atol=1e-5), "gather-path mismatch"

    # ---------- larger vocab + multi-tile / multi-group coverage ----------
    num_classes2, hidden2, batch2 = 3000, 128, 16
    embedder2 = LabelEmbedder(num_classes2, hidden2, 0.1, k_table2)
    labels2 = jax.random.randint(k_labels2, (batch2,), 0, num_classes2,
                                 dtype=jnp.int32)
    ref2 = jnp.take(embedder2.embedding_table, labels2, axis=0)

    # auto dispatch (tiny 512B rows -> stays on the MXU one-hot path)
    out2 = jax.block_until_ready(embedder2(labels2, train=False))
    assert jnp.allclose(out2, ref2, atol=1e-5), "auto-dispatch mismatch"

    # forced gather: 1 grid tile, 2 DMA groups (exercises the sem window)
    out2_g = jax.block_until_ready(
        label_embed_pallas(labels2, embedder2._padded_table, use_gather=True))
    assert jnp.allclose(out2_g, ref2, atol=1e-5), "gather multi-group mismatch"

    # forced gather: 2 grid tiles
    out2_g2 = jax.block_until_ready(
        label_embed_pallas(labels2, embedder2._padded_table,
                           use_gather=True, tb=8))
    assert jnp.allclose(out2_g2, ref2, atol=1e-5), "gather multi-tile mismatch"

    # forced matmul: 2 grid tiles
    out2_m = jax.block_until_ready(
        label_embed_pallas(labels2, embedder2._padded_table,
                           use_gather=False, tb=8))
    assert jnp.allclose(out2_m, ref2, atol=1e-5), "matmul multi-tile mismatch"

    # ---------- awkward (non multiple-of-8) batch: padding tightness ----------
    batch3 = 13
    labels3 = jax.random.randint(k_labels3, (batch3,), 0, num_classes,
                                 dtype=jnp.int32)
    out3 = jax.block_until_ready(embedder(labels3, train=False))
    ref3 = jnp.take(embedder.embedding_table, labels3, axis=0)
    assert out3.shape == (batch3, hidden_size)
    assert jnp.allclose(out3, ref3, atol=1e-5), "awkward-batch mismatch"

    print("KERNEL_OK")
</pallas_src>

<mosaic_0001>
module attributes {stable_mosaic.version = 11 : i64} {
  func.func @_onehot_matmul_kernel(%arg0: i32, %arg1: memref<8x1xi32, #tpu.memory_space<vmem>>, %arg2: memref<128x128xf32, #tpu.memory_space<vmem>>, %arg3: memref<8x128xf32, #tpu.memory_space<vmem>>) attributes {dimension_semantics = [#tpu.dimension_semantics<parallel>], iteration_bounds = array<i64: 1>, scalar_prefetch = 0 : i64, scratch_operands = 0 : i64, tpu.core_type = #tpu.core_type<tc>, window_params = [{transform_indices = @transform_0, window_bounds = array<i64: 8, 1>}, {pipeline_mode = #tpu.pipeline_mode<synchronous>, transform_indices = @transform_1, window_bounds = array<i64: 128, 128>}, {transform_indices = @transform_2, window_bounds = array<i64: 8, 128>}]} {
    %c0 = arith.constant 0 : index
    %c0_0 = arith.constant 0 : index
    %0 = vector.load %arg1[%c0, %c0_0] : memref<8x1xi32, #tpu.memory_space<vmem>>, vector<8x1xi32>
    %1 = tpu.iota {dimensions = array<i32: 1>} : vector<8x128xi32>
    %2 = vector.broadcast %0 : vector<8x1xi32> to vector<8x128xi32>
    %3 = arith.cmpi eq, %2, %1 : vector<8x128xi32>
    %4 = arith.extui %3 : vector<8x128xi1> to vector<8x128xi32>
    %5 = arith.sitofp %4 : vector<8x128xi32> to vector<8x128xf32>
    %c0_1 = arith.constant 0 : index
    %c0_2 = arith.constant 0 : index
    %6 = vector.load %arg2[%c0_1, %c0_2] : memref<128x128xf32, #tpu.memory_space<vmem>>, vector<128x128xf32>
    %cst = arith.constant dense<0.000000e+00> : vector<8x128xf32>
    %7 = tpu.matmul %5, %6, %cst {dimension_numbers = #tpu.dot_dimension_numbers<[1], [0], [0], [1], [0, 0, 1, 1], [], []>} : vector<8x128xf32>, vector<128x128xf32>, vector<8x128xf32> -> vector<8x128xf32>
    %c0_3 = arith.constant 0 : index
    %c0_4 = arith.constant 0 : index
    %8 = vector.load %arg3[%c0_3, %c0_4] : memref<8x128xf32, #tpu.memory_space<vmem>>, vector<8x128xf32>
    tpu.vector_store %arg3[%c0_3, %c0_4], %7 {strides = array<i32>} : memref<8x128xf32, #tpu.memory_space<vmem>>, vector<8x128xf32>,
    return
  }
  func.func @transform_0(%arg0: i32) -> (i32, i32) {
    %c0_i32 = arith.constant 0 : i32
    %c0_i32_0 = arith.constant 0 : i32
    return %arg0, %c0_i32 : i32, i32
  }
  func.func @transform_1(%arg0: i32) -> (i32, i32) {
    %c0_i32 = arith.constant 0 : i32
    %c0_i32_0 = arith.constant 0 : i32
    %c0_i32_1 = arith.constant 0 : i32
    return %c0_i32, %c0_i32_0 : i32, i32
  }
  func.func @transform_2(%arg0: i32) -> (i32, i32) {
    %c0_i32 = arith.constant 0 : i32
    %c0_i32_0 = arith.constant 0 : i32
    return %arg0, %c0_i32 : i32, i32
  }
}

</mosaic_0001>

<bundles_post_ra>
// kernel: label_embed_pallas.1
= control target key start
LH: loop header
LB: loop body
LE: loop exit
PB: predicated region body
PF: predicated region fallthrough
CT: control target
= control target key end

     0   :  { %7 = vsyncpa [#allocation3], 0  ;;  %s182_s0 = inlined_call_operand.vmem [shape: s32[8,1], index: 0, kind: input, shape index: {}]   ;;  %s183_s1 = inlined_call_operand.hbm [shape: f32[128,128], index: 1, kind: input, shape index: {}]   ;;  %s184_s2 = inlined_call_operand.hbm [shape: f32[8,128], index: 2, kind: output, shape index: {}]  }
   0x1   :  { %8 = vsyncpa [#allocation4], 0  ;;  %s15_s11 = sshll.u32 %s183_s1, 4  ;;  %s152_s12 = smov [#allocation2]   ;;  %s16_s11 = int_to_ptr.hbm [resolvable:$true] %s15_s11 }
   0x2   :  { %s17_s13 = sshll.u32 %s152_s12, 4  ;;  %s153_s14 = smov 128   ;;  %s18_s13 = int_to_ptr.vmem [resolvable:$true] %s17_s13 }
   0x3   :  { %s154_s15 = smov 8  }
   0x4   :  { %23 = dma.hbm_to_vmem [thread:$0]  %s16_s11, 2048, %s18_s13, [#allocation3], %s153_s14, %s153_s14, %s154_s15  }
   0x5   :  { %148 = dma.done.wait [#allocation3], 2048  }
   0x6   :  { %149 = vsyncadd [#allocation3], 4294965248  ;;  %v155_v0 = vmov 0   ;;  %v28_v1 = vld [vmem:[%s182_s0] sm:$0xff]  ;;  %v52_v2 = vld [vmem:[#allocation2 + $0x78] sm:$0xff]  ;;  %v29_v18 = vlaneseq  ;;  %v156_v21 = vmov 1.0  }
   0x7   :  { %99 = vset.pattern.permute.xlu0 %v155_v0  ;;  %v51_v3 = vld [vmem:[#allocation2 + $0x70] sm:$0xff]  ;;  %53 = vmatpush.msra.mxu0 %v52_v2  ;;  %v50_v4 = vld [vmem:[#allocation2 + $0x68] sm:$0xff]  ;;  %v49_v5 = vld [vmem:[#allocation2 + $0x60] sm:$0xff]  ;;  %s157_s0 = smov [#allocation5]   ;;  %s81_s20 = sshll.u32 %s184_s2, 4  ;;  %s82_s20 = int_to_ptr.hbm [resolvable:$true] %s81_s20 }
   0x8   :  { %32 = vperm.xlu0 %99, %v28_v1   ;;  %v48_v6 = vld [vmem:[#allocation2 + $0x58] sm:$0xff]  ;;  %v47_v7 = vld [vmem:[#allocation2 + $0x50] sm:$0xff]  ;;  %v46_v8 = vld [vmem:[#allocation2 + $0x48] sm:$0xff]  ;;  %v30_v19 = vand.u32 127, %v29_v18  ;;  %s79_s1 = sshll.u32 %s157_s0, 4  ;;  %s80_s1 = int_to_ptr.vmem [resolvable:$true] %s79_s1 }
   0x9   :  { %54 = vmatpush.msra.mxu0 %v51_v3  ;;  %v45_v9 = vld [vmem:[#allocation2 + $0x40] sm:$0xff]  ;;  %v44_v10 = vld [vmem:[#allocation2 + $0x38] sm:$0xff]  ;;  %v43_v11 = vld [vmem:[#allocation2 + $0x30] sm:$0xff] }
   0xa   :  { %v42_v12 = vld [vmem:[#allocation2 + $0x28] sm:$0xff]  ;;  %v41_v13 = vld [vmem:[#allocation2 + $0x20] sm:$0xff]  ;;  %v40_v14 = vld [vmem:[#allocation2 + $0x18] sm:$0xff] }
   0xb   :  { %55 = vmatpush.msra.mxu0 %v50_v4  ;;  %v39_v15 = vld [vmem:[#allocation2 + $0x10] sm:$0xff]  ;;  %v38_v16 = vld [vmem:[#allocation2 + $0x8] sm:$0xff]  ;;  %v37_v17 = vld [vmem:[#allocation2] sm:$0xff] }
   0xd   :  { %56 = vmatpush.msra.mxu0 %v49_v5 }
   0xf   :  { %57 = vmatpush.msra.mxu0 %v48_v6 }
  0x11   :  { %58 = vmatpush.msra.mxu0 %v47_v7 }
  0x13   :  { %59 = vmatpush.msra.mxu0 %v46_v8 }
  0x15   :  { %60 = vmatpush.msra.mxu0 %v45_v9 }
  0x17   :  { %61 = vmatpush.msra.mxu0 %v44_v10 }
  0x19   :  { %62 = vmatpush.msra.mxu0 %v43_v11 }
  0x1b   :  { %63 = vmatpush.msra.mxu0 %v42_v12 }
  0x1d   :  { %64 = vmatpush.msra.mxu0 %v41_v13 }
  0x1f   :  { %65 = vmatpush.msra.mxu0 %v40_v14 }
  0x21   :  { %66 = vmatpush.msra.mxu0 %v39_v15 }
  0x23   :  { %67 = vmatpush.msra.mxu0 %v38_v16 }
  0x25   :  { %68 = vmatpush.msra.mxu0 %v37_v17 }
  0x7a   :  { %v33_v20 = vpop.permute.xlu0 %32 }
  0x7b   :  { %vm34_vm0 = vcmp.eq.s32.totalorder %v33_v20, %v30_v19 }
  0x7c   :  { %92 = vmatmul.msk.f32.vlgmr.msra.gmra.mxu0 %vm34_vm0, %v156_v21 }
  0xf9   :  { %v70_v22 = vpop.f32.mrf.mxu0 }
  0xfa   :  { %73 = vst [vmem:[#allocation5] sm:$0xff] %v70_v22 }
  0xfb   :  { %84 = dma.vmem_to_hbm [thread:$0]  %s80_s1, 128, %s82_s20, [#allocation4]  }
  0xfc   :  { %150 = dma.done.wait [#allocation4], 128  }
  0xfd   :  { %151 = vsyncadd [#allocation4], 4294967168 }
  0xfe   :  { %89 = vsyncpa [#allocation3], 1 }
  0xff   :  { %90 = vsyncpa [#allocation4], 1 }

</bundles_post_ra>
